<compile_context>
chip_gen: v7x
topology: tpu7x:2x2x1
jax: 0.10.0
libtpu: 0.0.40
codegen_flags: <defaults>
</compile_context>

<pallas_src>
import functools

import jax
import jax.numpy as jnp
from jax.experimental import pallas as pl
from jax.experimental.pallas import tpu as pltpu

INF = 100000000.0
NUM_ANCHORS_PER_LOC = 3
CANDIDATE_TOPK_PER_LEVEL = 9

_VMEM_LIMIT = 48 * 1024 * 1024   # > v5e 16MiB / v6e,v7x 32MiB scoped defaults, < v7x 64MiB physical


# ----------------------------------------------------------------------------
# Pallas kernel 1: IoU matrix only, [G_pad, A_TILE] per step, grid=(B, A_tiles)
# ----------------------------------------------------------------------------
def _iou_kernel(anch_ref, gt_ref, iou_ref, *, a_tile, num_real_anchors):
    a = anch_ref[...]                      # [2, A_TILE]   (lane-dense anchor axis)
    a0 = a[0:1, :]                         # [1, A_TILE]
    a1 = a[1:2, :]
    g = gt_ref[0]                          # [G_pad, 3]  (left, right, valid)
    gl = g[:, 0:1]                         # [G_pad, 1]
    gr = g[:, 1:2]
    gv = g[:, 2:3]

    inter = jnp.maximum(jnp.minimum(a1, gr) - jnp.maximum(a0, gl), 0.0)   # [G_pad, A_TILE]
    union = jnp.maximum((a1 - a0) + (gr - gl) - inter, 1e-8)
    iou = inter / union

    # Mask invalid gt rows AND padded anchor lanes (global column >= A) to iou = 0.
    a_start = pl.program_id(1) * a_tile
    col = jax.lax.broadcasted_iota(jnp.int32, (1, a_tile), 1) + a_start
    valid = (gv > 0.0) & (col < num_real_anchors)
    iou_ref[0] = jnp.where(valid, iou, 0.0)


def _iou_batched(anchors_t, gt_lrv, *, B, G_pad, A_pad, A_tile, A_real):
    kern = functools.partial(_iou_kernel, a_tile=A_tile, num_real_anchors=A_real)
    return pl.pallas_call(
        kern,
        grid=(B, A_pad // A_tile),
        in_specs=[
            # Anchors shared across batch / A-chunks move with the A-chunk index only.
            # TODO(synk): verify via pl.lower_as_mlir that the constant batch index skips
            # the per-batch-step anchor DMA; otherwise stage anchors in a VMEM scratch.
            pl.BlockSpec((2, A_tile), lambda b, a: (0, a)),
            pl.BlockSpec((1, G_pad, 3), lambda b, a: (b, 0, 0)),
        ],
        out_specs=pl.BlockSpec((1, G_pad, A_tile), lambda b, a: (b, 0, a)),
        out_shape=jax.ShapeDtypeStruct((B, G_pad, A_pad), jnp.float32),
        compiler_params=pltpu.CompilerParams(
            dimension_semantics=("parallel", "parallel"),
            vmem_limit_bytes=_VMEM_LIMIT),
    )(anchors_t, gt_lrv)


# ----------------------------------------------------------------------------
# Pallas kernel 2: target encoding + smooth-L1 + per-image masked mean,
# B_TILE images packed on the sublane axis per grid step.
# ----------------------------------------------------------------------------
def _smooth_l1_kernel(anch_ref, g0_ref, g1_ref, rdx_ref, rdw_ref, mask_ref, out_ref):
    a = anch_ref[...]                      # [2, A_pad]  shared anchors
    a0 = a[0:1, :]
    a1 = a[1:2, :]
    aw = a1 - a0                           # [1, A_pad]
    actr = a0 + 0.5 * aw
    inv_aw = pl.reciprocal(aw, approx=True)    # EUP slot (VALU stays free)
    log_aw = jnp.log(aw)

    g0 = g0_ref[...]                       # [B_TILE, A_pad]  assigned gt left
    g1 = g1_ref[...]                       # [B_TILE, A_pad]  assigned gt right
    raw_gw = g1 - g0
    gctr = g0 + 0.5 * raw_gw
    gw = jnp.maximum(raw_gw, 1.0)          # clamp(min=1)

    dx_t = (gctr - actr) * inv_aw * 10.0       # / 0.1 normalization
    dw_t = (jnp.log(gw) - log_aw) * 5.0        # / 0.2 normalization (exact log diff)

    d0 = jnp.abs(dx_t - rdx_ref[...])          # [B_TILE, A_pad]
    d1 = jnp.abs(dw_t - rdw_ref[...])

    def _sl1(d):
        return jnp.where(d <= 1.0 / 9.0, 0.5 * 9.0 * d * d, d - 0.5 / 9.0)

    m = mask_ref[...]                          # [B_TILE, A_pad]  1.0 for positive anchors
    masked = (_sl1(d0) + _sl1(d1)) * m
    s = jnp.sum(masked, axis=-1, keepdims=True)      # [B_TILE, 1]
    cnt = 2.0 * jnp.sum(m, axis=-1, keepdims=True)   # #positives * 2 regression targets
    val = jnp.where(cnt > 0.0, s / jnp.maximum(cnt, 1.0), 0.0)
    out_ref[...] = jnp.broadcast_to(val, out_ref.shape)   # lane-dense 128-wide store


def _smooth_l1_batched(anchors_t, g0, g1, rdx, rdw, mask, *, B_pad, B_tile, A_pad):
    # TODO(synk): for very large A_pad (>~100k anchors) kernel 2 should also tile the
    # anchor axis with running (sum, count) accumulators; single-block in A for now.
    out = pl.pallas_call(
        _smooth_l1_kernel,
        grid=(B_pad // B_tile,),
        in_specs=[pl.BlockSpec((2, A_pad), lambda b: (0, 0)),       # anchors shared
                  pl.BlockSpec((B_tile, A_pad), lambda b: (b, 0)),
                  pl.BlockSpec((B_tile, A_pad), lambda b: (b, 0)),
                  pl.BlockSpec((B_tile, A_pad), lambda b: (b, 0)),
                  pl.BlockSpec((B_tile, A_pad), lambda b: (b, 0)),
                  pl.BlockSpec((B_tile, A_pad), lambda b: (b, 0))],
        out_specs=pl.BlockSpec((B_tile, 128), lambda b: (b, 0)),
        out_shape=jax.ShapeDtypeStruct((B_pad, 128), jnp.float32),
        compiler_params=pltpu.CompilerParams(
            dimension_semantics=("parallel",),
            vmem_limit_bytes=_VMEM_LIMIT),
    )(anchors_t, g0, g1, rdx, rdw, mask)
    return out[:, 0]                        # [B_pad] per-image losses


# ----------------------------------------------------------------------------
# ATSS positive assignment (get_atss_positives) — glue in plain JAX, vmapped over B.
# Distance matrix is built lazily per level (rank-1 structure) and fuses into top_k.
# ----------------------------------------------------------------------------
def _atss_assign_single(iou, anchor_cx, gt_lr, gt_valid, *, anchors_per_level, a_pad):
    """iou: [G, A_pad]; anchor_cx: [A_pad]; gt_lr: [G, 2]; gt_valid: [G] bool."""
    G = iou.shape[0]
    gt_ctr = 0.5 * (gt_lr[:, 0] + gt_lr[:, 1])                # [G]

    # Per-level top-k closest anchors per gt (k = min(9*3, A_level)); padding columns are
    # past all level slices so they can never become candidates.
    cand_idx_list = []
    start = 0
    for n_l in anchors_per_level:
        topk = min(CANDIDATE_TOPK_PER_LEVEL * NUM_ANCHORS_PER_LOC, n_l)
        d_level = jnp.abs(anchor_cx[None, start:start + n_l] - gt_ctr[:, None])  # [G, n_l]
        _, idx = jax.lax.top_k(-d_level, topk)                # [G, topk] (smallest dist)
        cand_idx_list.append(idx + start)                     # global anchor ids
        start += n_l
    cand_idx = jnp.concatenate(cand_idx_list, axis=1)         # [G, K]
    K = cand_idx.shape[1]

    cand_ious = jnp.take_along_axis(iou, cand_idx, axis=1)    # [G, K]
    iou_mean = jnp.mean(cand_ious, axis=1)
    if K > 1:
        iou_std = jnp.std(cand_ious, axis=1, ddof=1)          # torch unbiased std
    else:
        iou_std = jnp.zeros_like(iou_mean)                    # guard ddof=1 NaN at K==1
    iou_thresh = iou_mean + iou_std
    is_pos = cand_ious >= iou_thresh[:, None]                 # [G, K]

    # Candidate anchor centers must lie inside the gt box (margin 0.01).
    cand_cx = anchor_cx[cand_idx]                             # [G, K]
    l_ = cand_cx - gt_lr[:, 0:1]
    r_ = gt_lr[:, 1:2] - cand_cx
    in_box = jnp.minimum(l_, r_) > 0.01
    is_pos = is_pos & in_box & gt_valid[:, None]

    # Vectorized positive-candidate mask (one-hot reduction; replaces serialized scatter).
    onehot = (cand_idx[:, :, None] == jnp.arange(a_pad, dtype=cand_idx.dtype)[None, None, :])
    pos_cand_mask = jnp.any(onehot & is_pos[:, :, None], axis=1)   # [G, A_pad]

    ious_masked = jnp.where(pos_cand_mask, iou, -INF)
    vals = jnp.max(ious_masked, axis=0)                       # [A_pad]
    argm = jnp.argmax(ious_masked, axis=0)                    # [A_pad]
    positive = vals != -INF
    assigned = gt_lr[argm]                                    # [A_pad, 2]
    return positive, assigned


# ----------------------------------------------------------------------------
# Batched forward (jitted once; anchors_per_level is static)
# ----------------------------------------------------------------------------
@functools.partial(jax.jit, static_argnames=("anchors_per_level",))
def _regression_loss_forward(regressions, annotations, all_anchors, class_id, *,
                             anchors_per_level):
    B = regressions.shape[0]
    A = all_anchors.shape[0]
    M = annotations.shape[1]
    A_pad = pl.cdiv(A, 128) * 128
    G_pad = pl.cdiv(M, 8) * 8                                  # sublane multiple
    A_tile = min(A_pad, 1024)                                  # VMEM/vreg budget per step
    B_tile = min(B, 8)                                         # images packed per step (kernel 2)
    B_pad = pl.cdiv(B, B_tile) * B_tile

    pad_a = A_pad - A
    # Pad anchors with dummy (0, 1) boxes (width 1 -> no NaNs); additionally masked
    # to iou=0 inside kernel 1 so they can never become positive.
    if pad_a > 0:
        pad_rows = jnp.tile(jnp.asarray([[0.0, 1.0]], jnp.float32), (pad_a, 1))
        anchors_p = jnp.concatenate([all_anchors, pad_rows], axis=0)
    else:
        anchors_p = all_anchors
    anchors_t = anchors_p.T                                    # [2, A_pad] lane-dense
    anchor_cx = 0.5 * (anchors_p[:, 0] + anchors_p[:, 1])      # [A_pad]

    gt_lr = annotations[:, :, :2]                              # [B, M, 2]
    cls = annotations[:, :, 2]
    gt_valid = (cls != -1) & (cls == class_id)                 # [B, M]
    gt_lrv = jnp.concatenate([gt_lr, gt_valid[..., None].astype(jnp.float32)], axis=-1)
    gt_lrv = jnp.pad(gt_lrv, ((0, 0), (0, G_pad - M), (0, 0)))         # [B, G_pad, 3]
    gt_lr_p = jnp.pad(gt_lr, ((0, 0), (0, G_pad - M), (0, 0)))         # [B, G_pad, 2]
    gt_valid_p = jnp.pad(gt_valid, ((0, 0), (0, G_pad - M)))           # [B, G_pad]

    # Kernel 1: batched IoU matrix, [B, G_pad, A_pad].
    iou = _iou_batched(anchors_t, gt_lrv, B=B, G_pad=G_pad, A_pad=A_pad,
                       A_tile=A_tile, A_real=A)

    # ATSS candidate selection / assignment, vmapped over the batch.
    assign = functools.partial(_atss_assign_single,
                               anchors_per_level=anchors_per_level, a_pad=A_pad)
    positive, assigned = jax.vmap(assign, in_axes=(0, None, 0, 0))(
        iou, anchor_cx, gt_lr_p, gt_valid_p)                   # [B, A_pad], [B, A_pad, 2]

    # Kernel 2 inputs: five lane-dense [B_pad, A_pad] planes (images on sublanes).
    reg_p = jnp.pad(regressions, ((0, B_pad - B), (0, pad_a), (0, 0)))   # [B_pad, A_pad, 2]
    assigned_p = jnp.pad(assigned, ((0, B_pad - B), (0, 0), (0, 0)))     # [B_pad, A_pad, 2]
    mask = jnp.pad(positive.astype(jnp.float32), ((0, B_pad - B), (0, 0)))
    g0 = assigned_p[..., 0]
    g1 = assigned_p[..., 1]
    rdx = reg_p[..., 0]
    rdw = reg_p[..., 1]

    per_image = _smooth_l1_batched(anchors_t, g0, g1, rdx, rdw, mask,
                                   B_pad=B_pad, B_tile=B_tile, A_pad=A_pad)
    return jnp.mean(per_image[:B], keepdims=True)              # [1]


# ----------------------------------------------------------------------------
# RegressionLoss module
# ----------------------------------------------------------------------------
class RegressionLoss:
    def __init__(self, fcos=False, loss_type='l1', weight=1, num_anchors=3):
        self.fcos = fcos
        self.loss_type = loss_type
        self.weight = weight
        self.num_anchors = num_anchors

    def __call__(self, regressions, anchors_list, annotations, class_id,
                 regress_limits=(0.0, float('inf'))):
        if class_id == -1:
            raise ValueError
        if self.fcos or self.loss_type != 'l1':
            # TODO(synk): fcos / 'iou'/'giou' branches use undefined calc_giou / `losses`
            # in the reference and are not implemented.
            raise NotImplementedError

        all_anchors = jnp.concatenate([a.astype(jnp.float32) for a in anchors_list], axis=0)
        anchors_per_level = tuple(int(a.shape[0]) for a in anchors_list)

        # TODO(synk): reference also returns `regression_target`, which is undefined
        # (UnboundLocalError) on the non-fcos 'l1' path; only the loss is returned.
        return _regression_loss_forward(
            regressions.astype(jnp.float32),
            annotations.astype(jnp.float32),
            all_anchors,
            float(class_id),
            anchors_per_level=anchors_per_level)


# ----------------------------------------------------------------------------
# Deterministic example
# ----------------------------------------------------------------------------
def make_anchors(num_locs, stride, widths):
    centers = (jnp.arange(num_locs, dtype=jnp.float32) + 0.5) * stride
    w = jnp.asarray(widths, dtype=jnp.float32)
    left = centers[:, None] - 0.5 * w[None, :]
    right = centers[:, None] + 0.5 * w[None, :]
    return jnp.stack([left.reshape(-1), right.reshape(-1)], axis=1)


if __name__ == "__main__":
    key = jax.random.PRNGKey(0)
    k1, k2, k3 = jax.random.split(key, 3)

    # 3 pyramid levels, 3 anchors per location (num_anchors=3).
    anchors_list = [
        make_anchors(32, 2.0, (2.0, 3.0, 4.0)),   # [96, 2]
        make_anchors(16, 4.0, (4.0, 6.0, 8.0)),   # [48, 2]
        make_anchors(8, 8.0, (8.0, 12.0, 16.0)),  # [24, 2]
    ]
    A = sum(int(a.shape[0]) for a in anchors_list)  # 168

    B, M = 2, 4
    left = jax.random.uniform(k1, (B, M), minval=2.0, maxval=48.0)
    width = jax.random.uniform(k2, (B, M), minval=3.0, maxval=15.0)
    annotations = jnp.stack([left, left + width, jnp.full((B, M), 1.0)], axis=-1)  # [B, M, 3]
    regressions = 0.1 * jax.random.normal(k3, (B, A, 2), dtype=jnp.float32)        # [B, A, 2]

    loss_fn = RegressionLoss(fcos=False, loss_type='l1', weight=1, num_anchors=3)
    loss = loss_fn(regressions, anchors_list, annotations, class_id=1)
    loss = jax.block_until_ready(loss)
    assert loss.shape == (1,) and jnp.isfinite(loss).all()
    print("KERNEL_OK")
</pallas_src>

<mosaic_0001>
module attributes {stable_mosaic.version = 11 : i64} {
  func.func private @main(%arg0: i32) attributes {dimension_semantics = [#tpu.dimension_semantics<core_parallel>], iteration_bounds = array<i64: 2>, tpu.core_type = #tpu.core_type<sc_scalar_subcore>, window_params = []} {
    return
  }
}

module attributes {stable_mosaic.version = 11 : i64} {
  func.func private @main(%arg0: i32) attributes {dimension_semantics = [#tpu.dimension_semantics<core_parallel>], iteration_bounds = array<i64: 2>, tpu.core_type = #tpu.core_type<sc_scalar_subcore>, window_params = []} {
    return
  }
}

module attributes {stable_mosaic.version = 11 : i64} {
  func.func @_iou_kernel(%arg0: i32, %arg1: i32, %arg2: memref<2x256xf32, #tpu.memory_space<vmem>>, %arg3: memref<1x8x3xf32, #tpu.memory_space<vmem>>, %arg4: memref<1x8x256xf32, #tpu.memory_space<vmem>>) attributes {dimension_semantics = [#tpu.dimension_semantics<parallel>, #tpu.dimension_semantics<parallel>], iteration_bounds = array<i64: 2, 1>, scalar_prefetch = 0 : i64, scratch_operands = 0 : i64, tpu.core_type = #tpu.core_type<tc>, window_params = [{transform_indices = @transform_0, window_bounds = array<i64: 2, 256>}, {transform_indices = @transform_1, window_bounds = array<i64: 1, 8, 3>}, {transform_indices = @transform_2, window_bounds = array<i64: 1, 8, 256>}]} {
    %c0 = arith.constant 0 : index
    %c0_0 = arith.constant 0 : index
    %0 = vector.load %arg2[%c0, %c0_0] : memref<2x256xf32, #tpu.memory_space<vmem>>, vector<2x256xf32>
    %1 = vector.extract_strided_slice %0 {offsets = [0, 0], sizes = [1, 256], strides = [1, 1]} : vector<2x256xf32> to vector<1x256xf32>
    %2 = vector.extract_strided_slice %0 {offsets = [1, 0], sizes = [1, 256], strides = [1, 1]} : vector<2x256xf32> to vector<1x256xf32>
    %c0_1 = arith.constant 0 : index
    %c0_2 = arith.constant 0 : index
    %c0_3 = arith.constant 0 : index
    %3 = vector.load %arg3[%c0_1, %c0_2, %c0_3] : memref<1x8x3xf32, #tpu.memory_space<vmem>>, vector<1x8x3xf32>
    %4 = vector.shape_cast %3 : vector<1x8x3xf32> to vector<8x3xf32>
    %5 = vector.extract_strided_slice %4 {offsets = [0, 0], sizes = [8, 1], strides = [1, 1]} : vector<8x3xf32> to vector<8x1xf32>
    %6 = vector.extract_strided_slice %4 {offsets = [0, 1], sizes = [8, 1], strides = [1, 1]} : vector<8x3xf32> to vector<8x1xf32>
    %7 = vector.extract_strided_slice %4 {offsets = [0, 2], sizes = [8, 1], strides = [1, 1]} : vector<8x3xf32> to vector<8x1xf32>
    %8 = vector.broadcast %2 : vector<1x256xf32> to vector<8x256xf32>
    %9 = vector.broadcast %6 : vector<8x1xf32> to vector<8x256xf32>
    %10 = arith.minimumf %8, %9 : vector<8x256xf32>
    %11 = vector.broadcast %1 : vector<1x256xf32> to vector<8x256xf32>
    %12 = vector.broadcast %5 : vector<8x1xf32> to vector<8x256xf32>
    %13 = arith.maximumf %11, %12 : vector<8x256xf32>
    %14 = arith.subf %10, %13 : vector<8x256xf32>
    %cst = arith.constant 0.000000e+00 : f32
    %15 = vector.broadcast %cst : f32 to vector<8x256xf32>
    %16 = arith.maximumf %14, %15 : vector<8x256xf32>
    %17 = arith.subf %2, %1 : vector<1x256xf32>
    %18 = arith.subf %6, %5 : vector<8x1xf32>
    %19 = vector.broadcast %17 : vector<1x256xf32> to vector<8x256xf32>
    %20 = vector.broadcast %18 : vector<8x1xf32> to vector<8x256xf32>
    %21 = arith.addf %19, %20 : vector<8x256xf32>
    %22 = arith.subf %21, %16 : vector<8x256xf32>
    %cst_4 = arith.constant 9.99999993E-9 : f32
    %23 = vector.broadcast %cst_4 : f32 to vector<8x256xf32>
    %24 = arith.maximumf %22, %23 : vector<8x256xf32>
    %25 = arith.divf %16, %24 : vector<8x256xf32>
    %c256_i32 = arith.constant 256 : i32
    %26 = arith.muli %arg1, %c256_i32 : i32
    %27 = tpu.iota {dimensions = array<i32: 1>} : vector<1x256xi32>
    %28 = vector.broadcast %26 : i32 to vector<1x256xi32>
    %29 = arith.addi %27, %28 : vector<1x256xi32>
    %cst_5 = arith.constant 0.000000e+00 : f32
    %30 = vector.broadcast %cst_5 : f32 to vector<8x1xf32>
    %31 = arith.cmpf ogt, %7, %30 : vector<8x1xf32>
    %c168_i32 = arith.constant 168 : i32
    %32 = vector.broadcast %c168_i32 : i32 to vector<1x256xi32>
    %33 = arith.cmpi slt, %29, %32 : vector<1x256xi32>
    %34 = vector.broadcast %31 : vector<8x1xi1> to vector<8x256xi1>
    %35 = vector.broadcast %33 : vector<1x256xi1> to vector<8x256xi1>
    %36 = arith.andi %34, %35 : vector<8x256xi1>
    %cst_6 = arith.constant 0.000000e+00 : f32
    %37 = vector.broadcast %cst_6 : f32 to vector<8x256xf32>
    %38 = arith.select %36, %25, %37 : vector<8x256xi1>, vector<8x256xf32>
    %c0_7 = arith.constant 0 : index
    %c0_8 = arith.constant 0 : index
    %c0_9 = arith.constant 0 : index
    %39 = vector.load %arg4[%c0_7, %c0_8, %c0_9] : memref<1x8x256xf32, #tpu.memory_space<vmem>>, vector<1x8x256xf32>
    %40 = vector.shape_cast %39 : vector<1x8x256xf32> to vector<8x256xf32>
    %41 = vector.shape_cast %38 : vector<8x256xf32> to vector<1x8x256xf32>
    tpu.vector_store %arg4[%c0_7, %c0_8, %c0_9], %41 {strides = array<i32>} : memref<1x8x256xf32, #tpu.memory_space<vmem>>, vector<1x8x256xf32>,
    return
  }
  func.func @transform_0(%arg0: i32, %arg1: i32) -> (i32, i32) {
    %c0_i32 = arith.constant 0 : i32
    %c0_i32_0 = arith.constant 0 : i32
    return %c0_i32, %arg1 : i32, i32
  }
  func.func @transform_1(%arg0: i32, %arg1: i32) -> (i32, i32, i32) {
    %c0_i32 = arith.constant 0 : i32
    %c0_i32_0 = arith.constant 0 : i32
    %c0_i32_1 = arith.constant 0 : i32
    return %arg0, %c0_i32, %c0_i32_0 : i32, i32, i32
  }
  func.func @transform_2(%arg0: i32, %arg1: i32) -> (i32, i32, i32) {
    %c0_i32 = arith.constant 0 : i32
    %c0_i32_0 = arith.constant 0 : i32
    return %arg0, %c0_i32, %arg1 : i32, i32, i32
  }
}

module attributes {stable_mosaic.version = 11 : i64} {
  func.func @_smooth_l1_kernel(%arg0: i32, %arg1: memref<2x256xf32, #tpu.memory_space<vmem>>, %arg2: memref<2x256xf32, #tpu.memory_space<vmem>>, %arg3: memref<2x256xf32, #tpu.memory_space<vmem>>, %arg4: memref<2x256xf32, #tpu.memory_space<vmem>>, %arg5: memref<2x256xf32, #tpu.memory_space<vmem>>, %arg6: memref<2x256xf32, #tpu.memory_space<vmem>>, %arg7: memref<2x128xf32, #tpu.memory_space<vmem>>) attributes {dimension_semantics = [#tpu.dimension_semantics<parallel>], iteration_bounds = array<i64: 1>, scalar_prefetch = 0 : i64, scratch_operands = 0 : i64, tpu.core_type = #tpu.core_type<tc>, window_params = [{pipeline_mode = #tpu.pipeline_mode<synchronous>, transform_indices = @transform_0, window_bounds = array<i64: 2, 256>}, {transform_indices = @transform_1, window_bounds = array<i64: 2, 256>}, {transform_indices = @transform_2, window_bounds = array<i64: 2, 256>}, {transform_indices = @transform_3, window_bounds = array<i64: 2, 256>}, {transform_indices = @transform_4, window_bounds = array<i64: 2, 256>}, {transform_indices = @transform_5, window_bounds = array<i64: 2, 256>}, {transform_indices = @transform_6, window_bounds = array<i64: 2, 128>}]} {
    %c0 = arith.constant 0 : index
    %c0_0 = arith.constant 0 : index
    %0 = vector.load %arg1[%c0, %c0_0] : memref<2x256xf32, #tpu.memory_space<vmem>>, vector<2x256xf32>
    %1 = vector.extract_strided_slice %0 {offsets = [0, 0], sizes = [1, 256], strides = [1, 1]} : vector<2x256xf32> to vector<1x256xf32>
    %2 = vector.extract_strided_slice %0 {offsets = [1, 0], sizes = [1, 256], strides = [1, 1]} : vector<2x256xf32> to vector<1x256xf32>
    %3 = arith.subf %2, %1 : vector<1x256xf32>
    %cst = arith.constant 5.000000e-01 : f32
    %4 = vector.broadcast %cst : f32 to vector<1x256xf32>
    %5 = arith.mulf %4, %3 : vector<1x256xf32>
    %6 = arith.addf %1, %5 : vector<1x256xf32>
    %7 = tpu.reciprocal %3 {approx = true} : vector<1x256xf32> -> vector<1x256xf32>
    %8 = math.log %3 : vector<1x256xf32>
    %c0_1 = arith.constant 0 : index
    %c0_2 = arith.constant 0 : index
    %9 = vector.load %arg2[%c0_1, %c0_2] : memref<2x256xf32, #tpu.memory_space<vmem>>, vector<2x256xf32>
    %c0_3 = arith.constant 0 : index
    %c0_4 = arith.constant 0 : index
    %10 = vector.load %arg3[%c0_3, %c0_4] : memref<2x256xf32, #tpu.memory_space<vmem>>, vector<2x256xf32>
    %11 = arith.subf %10, %9 : vector<2x256xf32>
    %cst_5 = arith.constant 5.000000e-01 : f32
    %12 = vector.broadcast %cst_5 : f32 to vector<2x256xf32>
    %13 = arith.mulf %12, %11 : vector<2x256xf32>
    %14 = arith.addf %9, %13 : vector<2x256xf32>
    %cst_6 = arith.constant 1.000000e+00 : f32
    %15 = vector.broadcast %cst_6 : f32 to vector<2x256xf32>
    %16 = arith.maximumf %11, %15 : vector<2x256xf32>
    %17 = vector.broadcast %6 : vector<1x256xf32> to vector<2x256xf32>
    %18 = arith.subf %14, %17 : vector<2x256xf32>
    %19 = vector.broadcast %7 : vector<1x256xf32> to vector<2x256xf32>
    %20 = arith.mulf %18, %19 : vector<2x256xf32>
    %cst_7 = arith.constant 1.000000e+01 : f32
    %21 = vector.broadcast %cst_7 : f32 to vector<2x256xf32>
    %22 = arith.mulf %20, %21 : vector<2x256xf32>
    %23 = math.log %16 : vector<2x256xf32>
    %24 = vector.broadcast %8 : vector<1x256xf32> to vector<2x256xf32>
    %25 = arith.subf %23, %24 : vector<2x256xf32>
    %cst_8 = arith.constant 5.000000e+00 : f32
    %26 = vector.broadcast %cst_8 : f32 to vector<2x256xf32>
    %27 = arith.mulf %25, %26 : vector<2x256xf32>
    %c0_9 = arith.constant 0 : index
    %c0_10 = arith.constant 0 : index
    %28 = vector.load %arg4[%c0_9, %c0_10] : memref<2x256xf32, #tpu.memory_space<vmem>>, vector<2x256xf32>
    %29 = arith.subf %22, %28 : vector<2x256xf32>
    %30 = math.absf %29 : vector<2x256xf32>
    %c0_11 = arith.constant 0 : index
    %c0_12 = arith.constant 0 : index
    %31 = vector.load %arg5[%c0_11, %c0_12] : memref<2x256xf32, #tpu.memory_space<vmem>>, vector<2x256xf32>
    %32 = arith.subf %27, %31 : vector<2x256xf32>
    %33 = math.absf %32 : vector<2x256xf32>
    %c0_13 = arith.constant 0 : index
    %c0_14 = arith.constant 0 : index
    %34 = vector.load %arg6[%c0_13, %c0_14] : memref<2x256xf32, #tpu.memory_space<vmem>>, vector<2x256xf32>
    %cst_15 = arith.constant 0.111111112 : f32
    %35 = vector.broadcast %cst_15 : f32 to vector<2x256xf32>
    %36 = arith.cmpf ole, %30, %35 : vector<2x256xf32>
    %cst_16 = arith.constant 4.500000e+00 : f32
    %37 = vector.broadcast %cst_16 : f32 to vector<2x256xf32>
    %38 = arith.mulf %37, %30 : vector<2x256xf32>
    %39 = arith.mulf %38, %30 : vector<2x256xf32>
    %cst_17 = arith.constant 0.055555556 : f32
    %40 = vector.broadcast %cst_17 : f32 to vector<2x256xf32>
    %41 = arith.subf %30, %40 : vector<2x256xf32>
    %42 = arith.select %36, %39, %41 : vector<2x256xi1>, vector<2x256xf32>
    %cst_18 = arith.constant 0.111111112 : f32
    %43 = vector.broadcast %cst_18 : f32 to vector<2x256xf32>
    %44 = arith.cmpf ole, %33, %43 : vector<2x256xf32>
    %cst_19 = arith.constant 4.500000e+00 : f32
    %45 = vector.broadcast %cst_19 : f32 to vector<2x256xf32>
    %46 = arith.mulf %45, %33 : vector<2x256xf32>
    %47 = arith.mulf %46, %33 : vector<2x256xf32>
    %cst_20 = arith.constant 0.055555556 : f32
    %48 = vector.broadcast %cst_20 : f32 to vector<2x256xf32>
    %49 = arith.subf %33, %48 : vector<2x256xf32>
    %50 = arith.select %44, %47, %49 : vector<2x256xi1>, vector<2x256xf32>
    %51 = arith.addf %42, %50 : vector<2x256xf32>
    %52 = arith.mulf %51, %34 : vector<2x256xf32>
    %cst_21 = arith.constant dense<0.000000e+00> : vector<2xf32>
    %53 = vector.multi_reduction <add>, %52, %cst_21 [1] : vector<2x256xf32> to vector<2xf32>
    %54 = vector.shape_cast %53 : vector<2xf32> to vector<2x1xf32>
    %cst_22 = arith.constant dense<0.000000e+00> : vector<2xf32>
    %55 = vector.multi_reduction <add>, %34, %cst_22 [1] : vector<2x256xf32> to vector<2xf32>
    %56 = vector.shape_cast %55 : vector<2xf32> to vector<2x1xf32>
    %cst_23 = arith.constant 2.000000e+00 : f32
    %57 = vector.broadcast %cst_23 : f32 to vector<2x1xf32>
    %58 = arith.mulf %57, %56 : vector<2x1xf32>
    %cst_24 = arith.constant 0.000000e+00 : f32
    %59 = vector.broadcast %cst_24 : f32 to vector<2x1xf32>
    %60 = arith.cmpf ogt, %58, %59 : vector<2x1xf32>
    %cst_25 = arith.constant 1.000000e+00 : f32
    %61 = vector.broadcast %cst_25 : f32 to vector<2x1xf32>
    %62 = arith.maximumf %58, %61 : vector<2x1xf32>
    %63 = arith.divf %54, %62 : vector<2x1xf32>
    %cst_26 = arith.constant 0.000000e+00 : f32
    %64 = vector.broadcast %cst_26 : f32 to vector<2x1xf32>
    %65 = arith.select %60, %63, %64 : vector<2x1xi1>, vector<2x1xf32>
    %66 = vector.shape_cast %65 : vector<2x1xf32> to vector<2x1xf32>
    %67 = vector.broadcast %66 : vector<2x1xf32> to vector<2x128xf32>
    %c0_27 = arith.constant 0 : index
    %c0_28 = arith.constant 0 : index
    %68 = vector.load %arg7[%c0_27, %c0_28] : memref<2x128xf32, #tpu.memory_space<vmem>>, vector<2x128xf32>
    tpu.vector_store %arg7[%c0_27, %c0_28], %67 {strides = array<i32>} : memref<2x128xf32, #tpu.memory_space<vmem>>, vector<2x128xf32>,
    return
  }
  func.func @transform_0(%arg0: i32) -> (i32, i32) {
    %c0_i32 = arith.constant 0 : i32
    %c0_i32_0 = arith.constant 0 : i32
    %c0_i32_1 = arith.constant 0 : i32
    return %c0_i32, %c0_i32_0 : i32, i32
  }
  func.func @transform_1(%arg0: i32) -> (i32, i32) {
    %c0_i32 = arith.constant 0 : i32
    %c0_i32_0 = arith.constant 0 : i32
    return %arg0, %c0_i32 : i32, i32
  }
  func.func @transform_2(%arg0: i32) -> (i32, i32) {
    %c0_i32 = arith.constant 0 : i32
    %c0_i32_0 = arith.constant 0 : i32
    return %arg0, %c0_i32 : i32, i32
  }
  func.func @transform_3(%arg0: i32) -> (i32, i32) {
    %c0_i32 = arith.constant 0 : i32
    %c0_i32_0 = arith.constant 0 : i32
    return %arg0, %c0_i32 : i32, i32
  }
  func.func @transform_4(%arg0: i32) -> (i32, i32) {
    %c0_i32 = arith.constant 0 : i32
    %c0_i32_0 = arith.constant 0 : i32
    return %arg0, %c0_i32 : i32, i32
  }
  func.func @transform_5(%arg0: i32) -> (i32, i32) {
    %c0_i32 = arith.constant 0 : i32
    %c0_i32_0 = arith.constant 0 : i32
    return %arg0, %c0_i32 : i32, i32
  }
  func.func @transform_6(%arg0: i32) -> (i32, i32) {
    %c0_i32 = arith.constant 0 : i32
    %c0_i32_0 = arith.constant 0 : i32
    return %arg0, %c0_i32 : i32, i32
  }
}

</mosaic_0001>

<bundles_post_ra>
// kernel: _regression_loss_forward.2
= control target key start
LH: loop header
LB: loop body
LE: loop exit
PB: predicated region body
PF: predicated region fallthrough
CT: control target
= control target key end

     0   :  { %7 = vsyncpa [#allocation3], 0  ;;  %s697_s0 = inlined_call_operand.vmem [shape: f32[2,256], index: 0, kind: input, shape index: {}]   ;;  %s698_s1 = inlined_call_operand.vmem [shape: f32[2,8,3], index: 1, kind: input, shape index: {}]   ;;  %s699_s2 = inlined_call_operand.hbm [shape: f32[2,8,256], index: 2, kind: output, shape index: {}]  }
   0x1   :  { %9 = vsyncpa [#allocation3 + $0x1], 0  ;;  %s582_s9 = smov 0   ;;  %s584_s10 = smov 0  }
   0x2   :  { %s586_s11 = smov 0   ;;  %s588_s12 = smov 0  }
   0x3   :  { %s590_s13 = smov 0   ;;  %s592_s14 = smov 0  }
   0x4 LB: > { %s400_s15 = sadd.s32 4294967295, %s560_s14   ;;  %s401_s16 = sadd.s32 4294967294, %s560_s14   ;;  %s560_s14 = sphi %s592_s14, %s15_s14   ;;  %s556_s13 = sphi %s590_s13, %s706_s13   ;;  %s552_s12 = sphi %s588_s12, %s705_s12   ;;  %s548_s11 = sphi %s586_s11, %s704_s11   ;;  %s544_s10 = sphi %s584_s10, %s703_s10   ;;  %s540_s9 = sphi %s582_s9, %s702_s9  }
   0x5   : > { %s27_s17 = sadd.s32 1, %s556_s13  ;;  %s88_s18 = sadd.s32 1, %s548_s11 }
   0x6   : > { %p29_p0 = scmp.ge.s32.totalorder %s27_s17, 2  ;;  %p98_p1 = scmp.ne.s32.totalorder %s548_s11, %s544_s10 }
   0x7   : > { %p99_p2 = scmp.eq.s32.totalorder %s400_s15, 1  ;;  %p104_p3 = scmp.ne.s32.totalorder %s544_s10, %s540_s9 }
   0x8   : > { %s708_s17 = smov (%p29_p0, %s27_s17), 0  ;;  %p105_p5 = scmp.eq.s32.totalorder %s401_s16, 1 }
   0x9   : > { %p622_p4 = por %p99_p2, %p98_p1  ;;  %s83_s20 = ssub.s32 %s556_s13, %s708_s17 }
   0xa   : > { %p405_p6 = scmp.ge.s32.totalorder %s560_s14, 1  ;;  %p86_p7 = scmp.eq.s32.totalorder %s83_s20, 0 }
   0xb   : > { %p629_p8 = por %p105_p5, %p104_p3  ;;  %p139_p9 = scmp.lt.s32.totalorder %s560_s14, 3 }
   0xc   : > { %s635_s22 = scalar_select %p86_p7, %s548_s11, %s88_s18  }
   0xd   : > { %p140_p10 = pnand %p405_p6, %p139_p9 }
   0xe   : > { %p171_p11 = scmp.lt.s32.totalorder (!%p140_p10), %s552_s12, 1  ;;  %v562_v0 = vmov (!%p140_p10), 0   ;;  %v563_v1 = vmov (!%p140_p10), 1   ;;  %s564_s28 = smov (!%p140_p10), 1   ;;  %v565_v3 = vmov (!%p140_p10), 2   ;;  %v179_v7 = vlaneseq (!%p140_p10) }
   0xf   : > { %143 = sbr.rel (%p140_p10) target bundleno = 307 (0x133), region = 28  ;;  %474 = vset.pattern.permute.xlu1 (!%p140_p10), %v562_v0  ;;  %473 = vset.pattern.permute.xlu0 (!%p140_p10), %v563_v1  ;;  %v176_v13 = vld [vmem:[%s697_s0] sm:$0xf] (!%p140_p10)  ;;  %s162_s3 = sand.u32 (!%p140_p10), 1, %s544_s10  }
  0x10   : > { %v180_v8 = vshrl.u32 (!%p140_p10), %v179_v7, 7  ;;  %v232_v18 = vrot.slane (!%p140_p10), %v176_v13, 7  ;;  %v275_v45 = vand.u32 (!%p140_p10), 127, %v179_v7  ;;  %s406_s4 = sshll.u32 (!%p140_p10), %s162_s3, 4  ;;  %s413_s5 = sshll.u32 (!%p140_p10), %s552_s12, 8 }
  0x11   : > { %s164_s6 = scalar_lea.vmem (!%p140_p10), [#allocation2], %s406_s4  ;;  %s650_s16 = scalar_lea.hbm (!%p140_p10), %s699_s2, %s413_s5 }
  0x12   : > { %v206_v9 = vsub.s32 (!%p140_p10), 0, %v180_v8  ;;  %v210_v10 = vsub.s32 (!%p140_p10), 2, %v180_v8  ;;  %v181_v11 = vsub.s32 (!%p140_p10), 1, %v180_v8  ;;  %v185_v12 = vsub.s32 (!%p140_p10), 3, %v180_v8  ;;  %s315_s7 = sshll.u32 (!%p140_p10), %s164_s6, 4  ;;  %s566_s20 = smov (!%p140_p10), [#allocation2]   ;;  %s652_s7 = int_to_ptr.vmem [resolvable:$true] %s315_s7 }
  0x13   : > { %v234_v25 = vsub.f32 (!%p140_p10), %v176_v13, %v232_v18  ;;  %v276_v46 = vadd.s32 (!%p140_p10), 128, %v275_v45  ;;  %s482_s18 = scalar_lea.vmem (!%p140_p10), %s652_s7, 256 }
  0x14   : > { %v207_v14 = vrot.slane (!%p140_p10), %v176_v13, %v206_v9  ;;  %v211_v15 = vrot.slane (!%p140_p10), %v176_v13, %v210_v10  ;;  %v182_v16 = vrot.slane (!%p140_p10), %v176_v13, %v181_v11  ;;  %v186_v17 = vrot.slane (!%p140_p10), %v176_v13, %v185_v12  ;;  %p483_p12 = scmp.ne.s32.totalorder (!%p140_p10), %s652_s7, %s482_s18 }
  0x15   : > { %v243_v30 = vrot.slane (!%p140_p10), %v234_v25, %v181_v11  ;;  %v247_v31 = vrot.slane (!%p140_p10), %v234_v25, %v185_v12  ;;  %vm282_vm1 = vcmp.lt.s32.totalorder (!%p140_p10), %v276_v46, 168 }
  0x16   : > { %s172_s23 = scalar_select %p171_p11, %s552_s12, 1  ;;  %v217_v19 = vrot.slane %v207_v14, %v206_v9  ;;  %v221_v20 = vrot.slane %v211_v15, %v206_v9  ;;  %v192_v21 = vrot.slane %v182_v16, %v181_v11  ;;  %v196_v22 = vrot.slane %v186_v17, %v181_v11 }
  0x17   : > { %v253_v34 = vrot.slane %v243_v30, %v181_v11  ;;  %v257_v35 = vrot.slane %v247_v31, %v181_v11  ;;  %s299_s12 = scalar_lea.sflag [#allocation3], %s162_s3  ;;  %p484_p13 = pnand %p483_p12, %p622_p4 }
  0x18   : > { %s407_s24 = sshll.u32 %s172_s23, 3  ;;  %s486_s23 = sshll.u32 %s566_s20, 4  ;;  %s487_s23 = int_to_ptr.vmem [resolvable:$false] %s486_s23 }
  0x19   : > { %s174_s27 = scalar_lea.vmem %s698_s1, %s407_s24  ;;  %p485_p0 = pneg %p484_p13 }
  0x1a   : > { %v177_v2 = vld [vmem:[%s174_s27] sm:$0xff]  ;;  %s488_s24 = scalar_lea.vmem %s487_s23, 512  ;;  %p489_p1 = scmp.lt.s32.totalorder %s652_s7, %s487_s23 }
  0x1b   : > { %235 = vrot.lane.b32.xlu0 %v177_v2, %s564_s28  ;;  %223 = vperm.xlu1 %474, %v177_v2   ;;  %vm280_vm0 = vcmp.gt.f32.partialorder %v177_v2, 0.0  ;;  %p490_p2 = scmp.lt.s32.totalorder %s488_s24, %s482_s18 }
  0x1c   : > { %v283_v6 = vsel %vm280_vm0, 1, %v562_v0 }
  0x1d   : > { %p491_p3 = por %p490_p2, %p489_p1 }
  0x1f   : > { %199 = vperm.xlu0 %473, %v177_v2   ;;  %475 = vset.pattern.permute.xlu1 %v563_v1  ;;  %p492_p5 = pnand %p491_p3, %p485_p0 }
  0x23   : > { %477 = vset.pattern.permute.xlu0 %v565_v3 }
  0x8d   : > { %v236_v4 = vpop.permute.xlu0 %235 }
  0x8e   : > { %v238_v5 = vsub.f32 %v177_v2, %v236_v4 }
  0x90   : > { %260 = vperm.xlu1 %475, %v238_v5  }
  0x94   : > { %476 = vset.pattern.permute.xlu1 %v565_v3 }
  0x95   : > { %285 = vperm.xlu1 %476, %v283_v6  }
  0x9a   : > { %v224_v23 = vpop.permute.xlu1 %223 }
  0x9b   : > { %v226_v26 = vmax.f32 %v217_v19, %v224_v23  ;;  %v227_v27 = vmax.f32 %v221_v20, %v224_v23 }
  0x9e   : > { %v200_v24 = vpop.permute.xlu0 %199 }
  0x9f   : > { %v202_v28 = vmin.f32 %v192_v21, %v200_v24  ;;  %v203_v29 = vmin.f32 %v196_v22, %v200_v24 }
  0xa1   : > { %v228_v32 = vsub.f32 %v202_v28, %v226_v26  ;;  %v229_v33 = vsub.f32 %v203_v29, %v227_v27 }
  0xa3   : > { %v230_v36 = vmax.f32 %v228_v32, 0.0  ;;  %v231_v37 = vmax.f32 %v229_v33, 0.0 }
 0x10f   : > { %v261_v38 = vpop.permute.xlu1 %260 }
 0x110   : > { %v263_v39 = vadd.f32 %v261_v38, %v253_v34  ;;  %v264_v40 = vadd.f32 %v261_v38, %v257_v35 }
 0x112   : > { %v265_v41 = vsub.f32 %v263_v39, %v230_v36  ;;  %v266_v42 = vsub.f32 %v264_v40, %v231_v37 }
 0x114   : > { %v267_v43 = vmax.f32 %v265_v41, 1e-08  ;;  %v268_v44 = vmax.f32 %v266_v42, 1e-08  ;;  %v286_v47 = vpop.permute.xlu1 %285 }
 0x115   : > { %vm287_vm2 = vcmp.eq.s32.totalorder %v286_v47, 1 }
 0x116   : > { %478 = vrcp.f32 %v267_v43  ;;  %vm293_vm3 = vmand %vm287_vm2, %vm282_vm1 }
 0x117   : > { %480 = vrcp.f32 %v268_v44 }
 0x120   : > { %v479_v48 = vpop.eup %478 }
 0x121   : > { %v481_v49 = vpop.eup %480  ;;  %v270_v50 = vmul.f32 %v479_v48, %v230_v36 }
 0x122   : > { %v272_v51 = vmul.f32 %v481_v49, %v231_v37 }
 0x123   : > { %v294_v52 = vsel %vm287_vm2, %v270_v50, 0.0 }
 0x124   : > { %v295_v53 = vsel %vm293_vm3, %v272_v51, 0.0  ;;  %296 = vst [vmem:[%s164_s6] sm:$0xff] %v294_v52 }
 0x125   : > { %297 = vst [vmem:[%s164_s6 + $0x8] sm:$0xff] %v295_v53 }
 0x126   : > { %495 = shalt.err (!%p492_p5)
}
 0x127   : > { %s496_s25 = scalar_lea.hbm %s650_s16, 256  ;;  %s500_s28 = scalar_lea.hbm %s699_s2, 512 }
 0x128   : > { %p497_p6 = scmp.ne.s32.totalorder %s650_s16, %s496_s25  ;;  %p501_p10 = scmp.lt.u32.totalorder %s650_s16, %s699_s2 }
 0x129   : > { %p502_p11 = scmp.lt.u32.totalorder %s500_s28, %s496_s25  ;;  %p504_p13 = scmp.lt.u32.totalorder %s496_s25, %s650_s16 }
 0x12a   : > { %p498_p7 = pnand %p497_p6, %p622_p4 }
 0x12b   : > { %p503_p12 = por %p502_p11, %p501_p10 }
 0x12c   : > { %p499_p9 = pneg %p498_p7 }
 0x12d   : > { %p505_p0 = por %p504_p13, %p503_p12 }
 0x12f   : > { %p506_p1 = pnand %p505_p0, %p499_p9 }
 0x131   : > { %509 = shalt.err (!%p506_p1)
}
 0x132   : > { %414 = dma.vmem_to_hbm [thread:$0]  (%p622_p4), %s652_s7, 256, %s650_s16, %s299_s12  }
 0x133 PF: > { %p420_p2 = scmp.ge.s32.totalorder %s560_s14, 2  ;;  %s327_s3 = sand.u32 1, %s540_s9  }
 0x134   : > { %s328_s4 = scalar_lea.sflag [#allocation3], %s327_s3 }
 0x135   : > { %p417_p3 = pnand %p420_p2, %p629_p8 }
 0x137   : > { %535 = dma.done.wait (!%p417_p3), %s328_s4, 256  }
 0x138   : > { %537 = vsyncadd (!%p417_p3), %s328_s4, 4294967040  ;;  %s15_s14 = sadd.s32 1, %s560_s14   ;;  %s702_s9 = smov %s544_s10 }
 0x139   : > { %p12_p5 = scmp.ge.s32.totalorder %s15_s14, 4   ;;  %s703_s10 = smov %s548_s11 }
 0x13a   : > { %s704_s11 = smov %s635_s22  ;;  %s705_s12 = smov %s556_s13 }
 0x13b   : > { %s706_s13 = smov %s708_s17  ;;  %14 = sbr.rel (!%p12_p5) target bundleno = 4 (0x4), region = 66 }
 0x142   :  { %333 = vsyncpa [#allocation3], 1 }
 0x143   :  { %335 = vsyncpa [#allocation3 + $0x1], 1 }

// kernel: _regression_loss_forward.3
= control target key start
LH: loop header
LB: loop body
LE: loop exit
PB: predicated region body
PF: predicated region fallthrough
CT: control target
= control target key end

     0   :  { %v44_v0 = vlaneseq  ;;  %v215_v1 = vmov 1983009808   ;;  %vm170_vm0 = vcmask 1041408   ;;  %s287_s0 = inlined_call_operand.vmem [shape: f32[2,256], index: 0, kind: input, shape index: {}]   ;;  %s288_s1 = inlined_call_operand.vmem [shape: f32[2,256], index: 1, kind: input, shape index: {}]   ;;  %s289_s2 = inlined_call_operand.vmem [shape: f32[2,256], index: 2, kind: input, shape index: {}]   ;;  %s290_s5 = inlined_call_operand.vmem [shape: f32[2,256], index: 5, kind: input, shape index: {}]   ;;  %s291_s3 = inlined_call_operand.vmem [shape: f32[2,256], index: 3, kind: input, shape index: {}]   ;;  %s292_s4 = inlined_call_operand.vmem [shape: f32[2,256], index: 4, kind: input, shape index: {}]   ;;  %s293_s6 = inlined_call_operand.vmem [shape: f32[2,128], index: 6, kind: output, shape index: {}]  }
   0x1   :  { %v66_v2 = vunpack.c.l.s4 %v215_v1  ;;  %v23_v3 = vld [vmem:[%s287_s0] sm:$0xf] }
   0x2   :  { %v37_v4 = vld [vmem:[%s288_s1] sm:$0xf]  ;;  %v25_v5 = vrot.slane %v23_v3, 7  ;;  %v45_v7 = vshrl.u32 %v44_v0, 7 }
   0x3   :  { %v38_v6 = vld [vmem:[%s289_s2] sm:$0xf]  ;;  %v67_v8 = vunpack.c.0.s8 %v66_v2 }
   0x4   :  { %v263_v9 = vld [vmem:[%s290_s5] sm:$0xf]  ;;  %v39_v10 = vsub.f32 %v38_v6, %v37_v4  ;;  %v27_v12 = vsub.f32 %v23_v3, %v25_v5  ;;  %v46_v15 = vsub.s32 0, %v45_v7  ;;  %v50_v17 = vsub.s32 2, %v45_v7 }
   0x5   :  { %v265_v11 = vsub.s32 %v67_v8, %v45_v7  ;;  %v77_v26 = vsub.s32 1, %v45_v7  ;;  %v81_v27 = vsub.s32 3, %v45_v7  ;;  %v140_v53 = vld [vmem:[%s291_s3] sm:$0xf] }
   0x6   :  { %v28_v14 = vmul.f32 0.5, %v27_v12  ;;  %207 = vrcp.f32 %v27_v12  ;;  %v42_v16 = vmax.f32 %v39_v10, 1.0  ;;  %v40_v28 = vmul.f32 0.5, %v39_v10  ;;  %v143_v57 = vld [vmem:[%s292_s4] sm:$0xf] }
   0x7   :  { %v183_v13 = vrot.slane %v263_v9, %v265_v11  ;;  %209 = vlog2.f32 %v27_v12 }
   0x8   :  { %v203_v20 = vrot.slane %v28_v14, 9  ;;  %211 = vlog2.f32 %v42_v16  ;;  %v41_v34 = vadd.f32 %v40_v28, %v37_v4 }
   0x9   :  { %v184_v18 = vcombine.high %v183_v13, %v183_v13  ;;  %v187_v19 = vsel %vm170_vm0, %v183_v13, 0.0 }
   0xa   :  { %v33_v22 = vadd.f32 %v203_v20, %v23_v3 }
   0xb   :  { %v188_v21 = vsel %vm170_vm0, %v184_v18, 0.0 }
   0xc   :  { %v189_v23 = vadd.f32 %v188_v21, %v187_v19  ;;  %v47_v24 = vrot.slane %v33_v22, %v46_v15  ;;  %v51_v25 = vrot.slane %v33_v22, %v50_v17 }
   0xe   :  { %190 = vadd.xlane.f32.xlu0 %v189_v23  ;;  %v57_v29 = vrot.slane %v47_v24, %v46_v15  ;;  %v61_v30 = vrot.slane %v51_v25, %v46_v15 }
  0x10   :  { %v208_v31 = vpop.eup %207  ;;  %v64_v32 = vcombine.low %v57_v29, %v61_v30 }
  0x11   :  { %v210_v33 = vpop.eup %209  ;;  %v78_v35 = vrot.slane %v208_v31, %v77_v26  ;;  %v82_v36 = vrot.slane %v208_v31, %v81_v27 }
  0x12   :  { %v36_v37 = vmul.f32 0.6931472, %v210_v33  ;;  %v71_v38 = vrot.slane %v64_v32, %v265_v11  ;;  %v212_v43 = vpop.eup %211 }
  0x13   :  { %v88_v39 = vrot.slane %v78_v35, %v77_v26  ;;  %v92_v40 = vrot.slane %v82_v36, %v77_v26  ;;  %v107_v49 = vmul.f32 0.6931472, %v212_v43 }
  0x14   :  { %v112_v41 = vrot.slane %v36_v37, %v77_v26  ;;  %v116_v42 = vrot.slane %v36_v37, %v81_v27  ;;  %v73_v44 = vsub.f32 %v41_v34, %v71_v38 }
  0x15   :  { %v95_v45 = vcombine.low %v88_v39, %v92_v40 }
  0x16   :  { %v122_v46 = vrot.slane %v112_v41, %v77_v26  ;;  %v126_v47 = vrot.slane %v116_v42, %v77_v26 }
  0x17   :  { %v102_v48 = vrot.slane %v95_v45, %v265_v11 }
  0x18   :  { %v129_v50 = vcombine.low %v122_v46, %v126_v47 }
  0x19   :  { %v104_v51 = vmul.f32 %v102_v48, %v73_v44 }
  0x1a   :  { %v136_v52 = vrot.slane %v129_v50, %v265_v11 }
  0x1b   :  { %v105_v54 = vmul.f32 10.0, %v104_v51 }
  0x1c   :  { %v138_v55 = vsub.f32 %v107_v49, %v136_v52 }
  0x1d   :  { %v141_v56 = vsub.f32 %v105_v54, %v140_v53 }
  0x1e   :  { %v139_v58 = vmul.f32 5.0, %v138_v55 }
  0x1f   :  { %v142_v59 = vand.u32 2147483647, %v141_v56 }
  0x20   :  { %v144_v60 = vsub.f32 %v139_v58, %v143_v57 }
  0x21   :  { %v148_v61 = vmul.f32 4.5, %v142_v59  ;;  %v204_v63 = vadd.f32 -0.055555556, %v142_v59  ;;  %vm147_vm1 = vcmp.le.f32.partialorder %v142_v59, 0.11111111 }
  0x22   :  { %v145_v62 = vand.u32 2147483647, %v144_v60 }
  0x23   :  { %v149_v0 = vmul.f32 %v148_v61, %v142_v59 }
  0x24   :  { %v153_v1 = vmul.f32 4.5, %v145_v62  ;;  %v205_v2 = vadd.f32 -0.055555556, %v145_v62  ;;  %vm152_vm2 = vcmp.le.f32.partialorder %v145_v62, 0.11111111 }
  0x25   :  { %v151_v3 = vsel %vm147_vm1, %v149_v0, %v204_v63 }
  0x26   :  { %v154_v4 = vmul.f32 %v153_v1, %v145_v62 }
  0x28   :  { %v156_v5 = vsel %vm152_vm2, %v154_v4, %v205_v2 }
  0x29   :  { %v157_v6 = vadd.f32 %v156_v5, %v151_v3 }
  0x2b   :  { %v158_v7 = vmul.f32 %v157_v6, %v263_v9 }
  0x2d   :  { %v166_v8 = vrot.slane %v158_v7, %v265_v11 }
  0x2f   :  { %v167_v10 = vcombine.high %v166_v8, %v166_v8  ;;  %v171_v12 = vsel %vm170_vm0, %v166_v8, 0.0 }
  0x31   :  { %v172_v13 = vsel %vm170_vm0, %v167_v10, 0.0 }
  0x32   :  { %v173_v14 = vadd.f32 %v172_v13, %v171_v12 }
  0x34   :  { %174 = vadd.xlane.f32.xlu0 %v173_v14 }
  0x9b   :  { %v191_v15 = vpop.xlane.xlu0 %190 }
  0x9c   :  { %v192_v16 = vmul.f32 2.0, %v191_v15 }
  0x9e   :  { %v194_v17 = vmax.f32 %v192_v16, 1.0  ;;  %vm193_vm3 = vcmp.gt.f32.partialorder %v192_v16, 0.0 }
  0xa0   :  { %213 = vrcp.f32 %v194_v17 }
  0xaa   :  { %v214_v18 = vpop.eup %213 }
  0xc1   :  { %v175_v19 = vpop.xlane.xlu0 %174 }
  0xc2   :  { %v196_v20 = vmul.f32 %v214_v18, %v175_v19 }
  0xc4   :  { %v197_v21 = vsel %vm193_vm3, %v196_v20, 0.0 }
  0xc5   :  { %198 = vst [vmem:[%s293_s6] sm:$0x3] %v197_v21 }

</bundles_post_ra>
